<compile_context>
chip_gen: v5e
topology: v5e:2x2
jax: 0.10.0
libtpu: 0.0.40
codegen_flags: <defaults>
</compile_context>

<pallas_src>
import functools

import jax
import jax.numpy as jnp
from jax import lax
from jax.experimental import pallas as pl
from jax.experimental.pallas import tpu as pltpu


def _cdiv(a, b):
    return -(-a // b)


def _hash_distill_kernel(xs_ref, xt_ref, o_ref, acc_ref, *,
                         tb, batch, steps, needs_mask):
    c = pl.program_id(0)   # batch-half / TensorCore index ("parallel")
    j = pl.program_id(1)   # reduction step within the half ("arbitrary")

    # Zero this core's running per-row accumulator on its first step.
    @pl.when(j == 0)
    def _init():
        acc_ref[...] = jnp.zeros_like(acc_ref)

    xs = xs_ref[...]
    xt = xt_ref[...]

    # Row reductions on the (otherwise idle) MXU: sum_k a[i, k] = (a @ 1)[i].
    ones = jnp.ones((xs.shape[-1], 1), dtype=xs.dtype)
    mm = functools.partial(jnp.dot, precision=lax.Precision.HIGHEST,
                           preferred_element_type=jnp.float32)
    dot = mm(xs * xt, ones)   # (TB, 1) f32
    ns2 = mm(xs * xs, ones)   # (TB, 1) f32
    nt2 = mm(xt * xt, ones)   # (TB, 1) f32

    # cos = dot / max(|xs|*|xt|, eps) == dot * rsqrt(max(ns2*nt2, eps^2))  (EUP)
    eps2 = jnp.float32(1e-8 * 1e-8)
    cos = dot * lax.rsqrt(jnp.maximum(ns2 * nt2, eps2))

    if needs_mask:
        # Rows past the true batch (ragged last tile / phantom tile) -> 0.
        blk = c * steps + j
        row = blk * tb + lax.broadcasted_iota(jnp.int32, cos.shape, 0)
        cos = jnp.where(row < batch, cos, jnp.float32(0.0))

    acc_ref[...] += cos

    # Finalize this core's partial sum; lane-dense (1, 128) store.
    @pl.when(j == pl.num_programs(1) - 1)
    def _finalize():
        o_ref[...] = jnp.full(o_ref.shape, jnp.sum(acc_ref[...]), jnp.float32)


def hash_distill(xS, xT, *, block_rows=None):
    """Pallas TPU implementation of HashDistill.forward(xS, xT) for (B, D) inputs."""
    assert xS.shape == xT.shape and xS.ndim == 2
    assert xS.dtype == xT.dtype
    B, D = xS.shape
    itemsize = jnp.dtype(xS.dtype).itemsize

    # ---- Tile selection (adaptive to D, dtype, and per-generation VMEM) ----
    d_pad = _cdiv(D, 128) * 128                 # lane-padded feature width
    row_bytes = d_pad * itemsize
    target_block_bytes = 2 << 20                # ~2 MiB per input block
    vmem_input_budget = 24 << 20                # 2 inputs x 2 buffers (v7x-safe)

    tb = max(16, (target_block_bytes // row_bytes // 16) * 16)
    tb_cap = max(16, (vmem_input_budget // (4 * row_bytes) // 16) * 16)
    tb = min(tb, tb_cap)
    if block_rows is not None:                  # test / tuning override
        tb = max(16, (block_rows // 16) * 16)

    if B <= tb:
        TB = B                                  # single full-extent tile (always legal)
    else:
        TB = tb                                 # multiple of 16 (ok for f32 & bf16)

    nb = _cdiv(B, TB)                           # number of real row-blocks
    NC = 2 if nb >= 2 else 1                    # shard batch over both TCs on v7x
    steps = _cdiv(nb, NC)
    needs_mask = (B % TB != 0) or (NC * steps != nb)

    # ---- VMEM accounting: set the scoped limit explicitly (v5e default 16 MiB) ----
    pipeline_bytes = 2 * 2 * TB * d_pad * itemsize          # 2 inputs, double-buffered
    acc_bytes = _cdiv(TB, 8) * 8 * 128 * 4                  # (TB,1) f32 scratch, padded
    out_bytes = 2 * NC * 128 * 4
    vmem_limit = max(pipeline_bytes + acc_bytes + out_bytes + (4 << 20), 16 << 20)

    def in_index_map(c, j):
        # Clamp the phantom tile (odd nb split over 2 cores) onto the last real
        # block; its rows are fully masked out in the kernel.
        return (jnp.minimum(c * steps + j, nb - 1), 0)

    kernel = functools.partial(
        _hash_distill_kernel, tb=TB, batch=B, steps=steps, needs_mask=needs_mask
    )

    cost = pl.CostEstimate(
        flops=6 * B * D + 8 * B,
        transcendentals=B,
        bytes_accessed=2 * B * D * itemsize + NC * 128 * 4,
    )

    partial_sums = pl.pallas_call(
        kernel,
        out_shape=jax.ShapeDtypeStruct((NC, 128), jnp.float32),
        grid_spec=pltpu.PrefetchScalarGridSpec(
            num_scalar_prefetch=0,
            grid=(NC, steps),
            in_specs=[
                pl.BlockSpec((TB, D), in_index_map),
                pl.BlockSpec((TB, D), in_index_map),
            ],
            out_specs=pl.BlockSpec((1, 128), lambda c, j: (c, 0)),
            scratch_shapes=[pltpu.VMEM((TB, 1), jnp.float32)],
        ),
        compiler_params=pltpu.CompilerParams(
            dimension_semantics=("parallel", "arbitrary"),
            vmem_limit_bytes=int(vmem_limit),
        ),
        cost_estimate=cost,
    )(xS, xT)

    # Final (tiny) reduction + affine in the wrapper: loss = 1 - mean(cos).
    return jnp.float32(1.0) - jnp.sum(partial_sums[:, 0]) / jnp.float32(B)


def hash_distill_ref(xS, xT):
    """Pure-JAX reference matching torch.nn.functional.cosine_similarity(dim=1)."""
    xS = xS.astype(jnp.float32)
    xT = xT.astype(jnp.float32)
    dot = jnp.sum(xS * xT, axis=1)
    ns = jnp.linalg.norm(xS, axis=1)
    nt = jnp.linalg.norm(xT, axis=1)
    cos = dot / jnp.maximum(ns * nt, 1e-8)
    return jnp.mean(1.0 - cos)


if __name__ == "__main__":
    key = jax.random.PRNGKey(0)
    k1, k2, k3, k4, k5, k6, k7, k8 = jax.random.split(key, 8)

    # Case 1: small hash-code batch, single full-extent tile (8 x 128-bit codes).
    xS1 = jax.random.normal(k1, (8, 128), dtype=jnp.float32)
    xT1 = jax.random.normal(k2, (8, 128), dtype=jnp.float32)
    loss1 = jax.block_until_ready(hash_distill(xS1, xT1))
    ref1 = jax.block_until_ready(hash_distill_ref(xS1, xT1))
    assert jnp.allclose(loss1, ref1, atol=1e-4, rtol=1e-4), (loss1, ref1)

    # Case 2: multi-tile reduction over both grid "cores", ragged last real
    # tile AND a phantom tile (B=40, TB=16 -> 3 real blocks split 2/2).
    xS2 = jax.random.normal(k3, (40, 128), dtype=jnp.float32)
    xT2 = jax.random.normal(k4, (40, 128), dtype=jnp.float32)
    loss2 = jax.block_until_ready(hash_distill(xS2, xT2, block_rows=16))
    ref2 = jax.block_until_ready(hash_distill_ref(xS2, xT2))
    assert jnp.allclose(loss2, ref2, atol=1e-4, rtol=1e-4), (loss2, ref2)

    # Case 3: bf16 inputs (products stay bf16; MXU accumulates in f32).
    xS3 = jax.random.normal(k5, (24, 128), dtype=jnp.bfloat16)
    xT3 = jax.random.normal(k6, (24, 128), dtype=jnp.bfloat16)
    loss3 = jax.block_until_ready(hash_distill(xS3, xT3, block_rows=16))
    ref3 = jax.block_until_ready(hash_distill_ref(xS3, xT3))
    assert jnp.allclose(loss3, ref3, atol=5e-2, rtol=5e-2), (loss3, ref3)

    # Case 4: short hash codes (D=64 < 128 lanes), single tile.
    xS4 = jax.random.normal(k7, (16, 64), dtype=jnp.float32)
    xT4 = jax.random.normal(k8, (16, 64), dtype=jnp.float32)
    loss4 = jax.block_until_ready(hash_distill(xS4, xT4))
    ref4 = jax.block_until_ready(hash_distill_ref(xS4, xT4))
    assert jnp.allclose(loss4, ref4, atol=1e-4, rtol=1e-4), (loss4, ref4)

    print("KERNEL_OK")
</pallas_src>

<mosaic_0001>
module attributes {stable_mosaic.version = 11 : i64} {
  func.func @_hash_distill_kernel(%arg0: i32, %arg1: i32, %arg2: memref<8x128xf32, #tpu.memory_space<vmem>>, %arg3: memref<8x128xf32, #tpu.memory_space<vmem>>, %arg4: memref<1x128xf32, #tpu.memory_space<vmem>>, %arg5: memref<8x1xf32, #tpu.memory_space<vmem>>) attributes {dimension_semantics = [#tpu.dimension_semantics<parallel>, #tpu.dimension_semantics<arbitrary>], iteration_bounds = array<i64: 1, 1>, scalar_prefetch = 0 : i64, scratch_operands = 1 : i64, tpu.core_type = #tpu.core_type<tc>, window_params = [{transform_indices = @transform_0, window_bounds = array<i64: 8, 128>}, {transform_indices = @transform_1, window_bounds = array<i64: 8, 128>}, {transform_indices = @transform_2, window_bounds = array<i64: 1, 128>}]} {
    %c0_i32 = arith.constant 0 : i32
    %0 = arith.cmpi eq, %arg1, %c0_i32 : i32
    %1 = arith.extui %0 : i1 to i32
    %c0_i32_0 = arith.constant 0 : i32
    %2 = arith.cmpi ne, %1, %c0_i32_0 : i32
    scf.if %2 {
      %cst_14 = arith.constant 0.000000e+00 : f32
      %23 = vector.broadcast %cst_14 : f32 to vector<8x1xf32>
      %c0_15 = arith.constant 0 : index
      %c0_16 = arith.constant 0 : index
      %24 = vector.load %arg5[%c0_15, %c0_16] : memref<8x1xf32, #tpu.memory_space<vmem>>, vector<8x1xf32>
      tpu.vector_store %arg5[%c0_15, %c0_16], %23 {strides = array<i32>} : memref<8x1xf32, #tpu.memory_space<vmem>>, vector<8x1xf32>,
    } else {
    }
    %c0 = arith.constant 0 : index
    %c0_1 = arith.constant 0 : index
    %3 = vector.load %arg2[%c0, %c0_1] : memref<8x128xf32, #tpu.memory_space<vmem>>, vector<8x128xf32>
    %c0_2 = arith.constant 0 : index
    %c0_3 = arith.constant 0 : index
    %4 = vector.load %arg3[%c0_2, %c0_3] : memref<8x128xf32, #tpu.memory_space<vmem>>, vector<8x128xf32>
    %cst = arith.constant 1.000000e+00 : f32
    %5 = vector.broadcast %cst : f32 to vector<128x1xf32>
    %6 = arith.mulf %3, %4 : vector<8x128xf32>
    %cst_4 = arith.constant dense<0.000000e+00> : vector<8x1xf32>
    %7 = tpu.matmul %6, %5, %cst_4 {dimension_numbers = #tpu.dot_dimension_numbers<[1], [0], [0], [1], [0, 0, 1, 1], [], []>, precision = #tpu.contract_precision<fp32>} : vector<8x128xf32>, vector<128x1xf32>, vector<8x1xf32> -> vector<8x1xf32>
    %8 = arith.mulf %3, %3 : vector<8x128xf32>
    %cst_5 = arith.constant dense<0.000000e+00> : vector<8x1xf32>
    %9 = tpu.matmul %8, %5, %cst_5 {dimension_numbers = #tpu.dot_dimension_numbers<[1], [0], [0], [1], [0, 0, 1, 1], [], []>, precision = #tpu.contract_precision<fp32>} : vector<8x128xf32>, vector<128x1xf32>, vector<8x1xf32> -> vector<8x1xf32>
    %10 = arith.mulf %4, %4 : vector<8x128xf32>
    %cst_6 = arith.constant dense<0.000000e+00> : vector<8x1xf32>
    %11 = tpu.matmul %10, %5, %cst_6 {dimension_numbers = #tpu.dot_dimension_numbers<[1], [0], [0], [1], [0, 0, 1, 1], [], []>, precision = #tpu.contract_precision<fp32>} : vector<8x128xf32>, vector<128x1xf32>, vector<8x1xf32> -> vector<8x1xf32>
    %12 = arith.mulf %9, %11 : vector<8x1xf32>
    %cst_7 = arith.constant 1.000000e-16 : f32
    %13 = vector.broadcast %cst_7 : f32 to vector<8x1xf32>
    %14 = arith.maximumf %12, %13 : vector<8x1xf32>
    %15 = math.rsqrt %14 : vector<8x1xf32>
    %16 = arith.mulf %7, %15 : vector<8x1xf32>
    %c0_8 = arith.constant 0 : index
    %c0_9 = arith.constant 0 : index
    %17 = vector.load %arg5[%c0_8, %c0_9] : memref<8x1xf32, #tpu.memory_space<vmem>>, vector<8x1xf32>
    %18 = arith.addf %17, %16 : vector<8x1xf32>
    %c0_10 = arith.constant 0 : index
    %c0_11 = arith.constant 0 : index
    %19 = vector.load %arg5[%c0_10, %c0_11] : memref<8x1xf32, #tpu.memory_space<vmem>>, vector<8x1xf32>
    tpu.vector_store %arg5[%c0_10, %c0_11], %18 {strides = array<i32>} : memref<8x1xf32, #tpu.memory_space<vmem>>, vector<8x1xf32>,
    %c0_i32_12 = arith.constant 0 : i32
    %20 = arith.cmpi eq, %arg1, %c0_i32_12 : i32
    %21 = arith.extui %20 : i1 to i32
    %c0_i32_13 = arith.constant 0 : i32
    %22 = arith.cmpi ne, %21, %c0_i32_13 : i32
    scf.if %22 {
      %c0_14 = arith.constant 0 : index
      %c0_15 = arith.constant 0 : index
      %23 = vector.load %arg5[%c0_14, %c0_15] : memref<8x1xf32, #tpu.memory_space<vmem>>, vector<8x1xf32>
      %24 = vector.shape_cast %23 : vector<8x1xf32> to vector<1x8x1xf32>
      %cst_16 = arith.constant dense<0.000000e+00> : vector<1xf32>
      %25 = vector.multi_reduction <add>, %24, %cst_16 [1, 2] : vector<1x8x1xf32> to vector<1xf32>
      %26 = vector.shape_cast %25 : vector<1xf32> to vector<1x1x1xf32>
      %27 = vector.extract %26[0, 0, 0] : f32 from vector<1x1x1xf32>
      %28 = vector.broadcast %27 : f32 to vector<1x128xf32>
      %c0_17 = arith.constant 0 : index
      %c0_18 = arith.constant 0 : index
      %29 = vector.load %arg4[%c0_17, %c0_18] : memref<1x128xf32, #tpu.memory_space<vmem>>, vector<1x128xf32>
      tpu.vector_store %arg4[%c0_17, %c0_18], %28 {strides = array<i32>} : memref<1x128xf32, #tpu.memory_space<vmem>>, vector<1x128xf32>,
    } else {
    }
    return
  }
  func.func @transform_0(%arg0: i32, %arg1: i32) -> (i32, i32) {
    %c1_i32 = arith.constant 1 : i32
    %0 = arith.muli %arg0, %c1_i32 : i32
    %1 = arith.addi %0, %arg1 : i32
    %c0_i32 = arith.constant 0 : i32
    %2 = arith.minsi %1, %c0_i32 : i32
    %c0_i32_0 = arith.constant 0 : i32
    %c0_i32_1 = arith.constant 0 : i32
    return %2, %c0_i32_0 : i32, i32
  }
  func.func @transform_1(%arg0: i32, %arg1: i32) -> (i32, i32) {
    %c1_i32 = arith.constant 1 : i32
    %0 = arith.muli %arg0, %c1_i32 : i32
    %1 = arith.addi %0, %arg1 : i32
    %c0_i32 = arith.constant 0 : i32
    %2 = arith.minsi %1, %c0_i32 : i32
    %c0_i32_0 = arith.constant 0 : i32
    %c0_i32_1 = arith.constant 0 : i32
    return %2, %c0_i32_0 : i32, i32
  }
  func.func @transform_2(%arg0: i32, %arg1: i32) -> (i32, i32) {
    %c0_i32 = arith.constant 0 : i32
    %c0_i32_0 = arith.constant 0 : i32
    return %arg0, %c0_i32 : i32, i32
  }
}

</mosaic_0001>

<bundles_post_ra>
// kernel: tpu_custom_call.1
= control target key start
LH: loop header
LB: loop body
LE: loop exit
PB: predicated region body
PF: predicated region fallthrough
CT: control target
= control target key end

     0   :  { %7 = vsyncpa [#allocation4], 0  ;;  %s820_s0 = inlined_call_operand.hbm [shape: f32[8,128], index: 0, kind: input, shape index: {}]   ;;  %s821_s1 = inlined_call_operand.hbm [shape: f32[8,128], index: 1, kind: input, shape index: {}]   ;;  %s822_s2 = inlined_call_operand.hbm [shape: f32[1,128], index: 2, kind: output, shape index: {}]  }
   0x1   :  { %8 = vsyncpa [#allocation7], 0 }
   0x2   :  { %9 = vsyncpa [#allocation5], 0  ;;  %s20_s11 = sshll.u32 %s820_s0, 4  ;;  %s608_s12 = smov [#allocation3]   ;;  %s21_s11 = int_to_ptr.hbm [resolvable:$true] %s20_s11 }
   0x3   :  { %s22_s13 = sshll.u32 %s608_s12, 4  ;;  %s36_s16 = sshll.u32 %s821_s1, 4  ;;  %s23_s13 = int_to_ptr.vmem [resolvable:$true] %s22_s13  ;;  %s37_s16 = int_to_ptr.hbm [resolvable:$true] %s36_s16 }
   0x4   :  { %25 = dma.hbm_to_vmem [thread:$0]  %s21_s11, 128, %s23_s13, [#allocation4]  }
   0x5   :  { %s609_s17 = smov [#allocation6]  }
   0x6   :  { %s38_s18 = sshll.u32 %s609_s17, 4  ;;  %s39_s18 = int_to_ptr.vmem [resolvable:$true] %s38_s18 }
   0x7   :  { %41 = dma.hbm_to_vmem [thread:$0]  %s37_s16, 128, %s39_s18, [#allocation7]  }
   0x8   :  { %602 = dma.done.wait [#allocation4], 128  }
   0x9   :  { %603 = vsyncadd [#allocation4], 4294967168 }
   0xa   :  { %604 = dma.done.wait [#allocation7], 128  }
   0xb   :  { %605 = vsyncadd [#allocation7], 4294967168  ;;  %v610_v0 = vmov 1.0   ;;  %v611_v1 = vmov 0.0   ;;  %v62_v2 = vld [vmem:[#allocation3] sm:$0xff]  ;;  %v647_v3 = vld [vmem:[#allocation6] sm:$0xff] }
   0xc   :  { %65 = vmatpush.msra.mxu0 %v610_v0  ;;  %126 = vmatpush.msra.mxu2 %v611_v1  ;;  %v64_v4 = vmul.f32 %v647_v3, %v62_v2  ;;  %v198_v8 = vmul.f32 %v62_v2, %v62_v2  ;;  %v332_v15 = vmul.f32 %v647_v3, %v647_v3  ;;  %vm60_vm0 = vcmask 7168   ;;  %s612_s0 = smov [#allocation8]   ;;  %s506_s21 = sshll.u32 %s822_s2, 4  ;;  %s507_s21 = int_to_ptr.hbm [resolvable:$true] %s506_s21 }
   0xd   :  { %133 = vmatpush.msra.mxu3 %v610_v0  ;;  %105 = vmatpush.msra.mxu1 %v611_v1  ;;  %61 = vst.msk [vmem:[#allocation2] sm:$0xff] %vm60_vm0, %v611_v1  ;;  %s504_s1 = sshll.u32 %s612_s0, 4  ;;  %s505_s1 = int_to_ptr.vmem [resolvable:$true] %s504_s1 }
   0xe   :  { %177 = vmatpush.msrb.mxu2 %v610_v0  ;;  %66 = vmatpush.msra.mxu0 %v610_v0  ;;  %v81_v5 = vand.u32 4294901760, %v64_v4  ;;  %v688_v10 = vand.u32 4294901760, %v198_v8  ;;  %v731_v17 = vand.u32 4294901760, %v332_v15 }
   0xf   :  { %134 = vmatpush.msra.mxu3 %v610_v0  ;;  %171 = vmatpush.msrb.mxu1 %v611_v1 }
  0x10   :  { %178 = vmatpush.msrb.mxu2 %v610_v0  ;;  %67 = vmatpush.msra.mxu0 %v610_v0  ;;  %v82_v6 = vsub.f32 %v64_v4, %v81_v5  ;;  %v699_v12 = vsub.f32 %v198_v8, %v688_v10  ;;  %v350_v18 = vsub.f32 %v332_v15, %v731_v17 }
  0x11   :  { %135 = vmatpush.msra.mxu3 %v610_v0  ;;  %107 = vmatmul.f32.vlgmr.msra.gmra.mxu1 %v81_v5 }
  0x12   :  { %179 = vmatpush.msrb.mxu2 %v610_v0  ;;  %68 = vmatpush.msra.mxu0 %v610_v0  ;;  %v83_v7 = vand.u32 4294901760, %v82_v6  ;;  %v217_v13 = vand.u32 4294901760, %v699_v12  ;;  %v351_v19 = vand.u32 4294901760, %v350_v18 }
  0x13   :  { %136 = vmatpush.msra.mxu3 %v610_v0  ;;  %199 = vmatpush.msra.mxu1 %v610_v0 }
  0x14   :  { %180 = vmatpush.msrb.mxu2 %v610_v0  ;;  %69 = vmatpush.msra.mxu0 %v610_v0  ;;  %v84_v9 = vsub.f32 %v82_v6, %v83_v7  ;;  %v218_v14 = vsub.f32 %v699_v12, %v217_v13  ;;  %v352_v20 = vsub.f32 %v350_v18, %v351_v19 }
  0x15   :  { %137 = vmatpush.msra.mxu3 %v610_v0  ;;  %200 = vmatpush.msra.mxu1 %v610_v0 }
  0x16   :  { %181 = vmatpush.msrb.mxu2 %v610_v0  ;;  %70 = vmatpush.msra.mxu0 %v610_v0  ;;  %v85_v11 = vand.u32 4294901760, %v84_v9  ;;  %v219_v16 = vand.u32 4294901760, %v218_v14  ;;  %v353_v21 = vand.u32 4294901760, %v352_v20 }
  0x17   :  { %138 = vmatpush.msra.mxu3 %v610_v0  ;;  %201 = vmatpush.msra.mxu1 %v610_v0 }
  0x18   :  { %182 = vmatpush.msrb.mxu2 %v610_v0  ;;  %71 = vmatpush.msra.mxu0 %v610_v0 }
  0x19   :  { %139 = vmatpush.msra.mxu3 %v610_v0  ;;  %202 = vmatpush.msra.mxu1 %v610_v0 }
  0x1a   :  { %183 = vmatpush.msrb.mxu2 %v610_v0  ;;  %72 = vmatpush.msra.mxu0 %v610_v0 }
  0x1b   :  { %140 = vmatpush.msra.mxu3 %v610_v0  ;;  %203 = vmatpush.msra.mxu1 %v610_v0 }
  0x1c   :  { %184 = vmatpush.msrb.mxu2 %v610_v0  ;;  %73 = vmatpush.msra.mxu0 %v610_v0 }
  0x1d   :  { %141 = vmatpush.msra.mxu3 %v610_v0  ;;  %204 = vmatpush.msra.mxu1 %v610_v0 }
  0x1e   :  { %185 = vmatpush.msrb.mxu2 %v610_v0  ;;  %74 = vmatpush.msra.mxu0 %v610_v0 }
  0x1f   :  { %142 = vmatpush.msra.mxu3 %v610_v0  ;;  %205 = vmatpush.msra.mxu1 %v610_v0 }
  0x20   :  { %186 = vmatpush.msrb.mxu2 %v610_v0  ;;  %75 = vmatpush.msra.mxu0 %v610_v0 }
  0x21   :  { %143 = vmatpush.msra.mxu3 %v610_v0  ;;  %129 = vmatmul.f32.vlgmr.msra.gmra.mxu2 %v82_v6 }
  0x22   :  { %187 = vmatpush.msrb.mxu2 %v610_v0  ;;  %76 = vmatpush.msra.mxu0 %v610_v0 }
  0x23   :  { %144 = vmatpush.msra.mxu3 %v610_v0  ;;  %206 = vmatpush.msra.mxu1 %v610_v0 }
  0x24   :  { %188 = vmatpush.msrb.mxu2 %v610_v0  ;;  %77 = vmatpush.msra.mxu0 %v610_v0 }
  0x25   :  { %145 = vmatpush.msra.mxu3 %v610_v0  ;;  %207 = vmatpush.msra.mxu1 %v610_v0 }
  0x26   :  { %189 = vmatpush.msrb.mxu2 %v610_v0  ;;  %78 = vmatpush.msra.mxu0 %v610_v0 }
  0x27   :  { %146 = vmatpush.msra.mxu3 %v610_v0  ;;  %208 = vmatpush.msra.mxu1 %v610_v0 }
  0x28   :  { %190 = vmatpush.msrb.mxu2 %v610_v0  ;;  %79 = vmatpush.msra.mxu0 %v610_v0 }
  0x29   :  { %147 = vmatpush.msra.mxu3 %v610_v0  ;;  %209 = vmatpush.msra.mxu1 %v610_v0 }
  0x2a   :  { %191 = vmatpush.msrb.mxu2 %v610_v0  ;;  %80 = vmatpush.msra.mxu0 %v610_v0 }
  0x2b   :  { %148 = vmatpush.msra.mxu3 %v610_v0  ;;  %86 = vmatmul.f32.vlgmr.msra.gmra.mxu0 %v85_v11 }
  0x2c   :  { %152 = vmatmul.f32.vlgmr.msra.gmra.mxu3 %v83_v7  ;;  %192 = vmatpush.msrb.mxu2 %v610_v0 }
  0x2d   :  { %311 = vmatpush.msrb.mxu3 %v610_v0  ;;  %173 = vmatmul.f32.vlgmr.msrb.gmra.mxu1 %v81_v5 }
  0x2e   :  { %239 = vmatpush.msra.mxu2 %v611_v1  ;;  %210 = vmatpush.msra.mxu1 %v610_v0 }
  0x2f   :  { %194 = vmatmul.f32.vlgmr.msrb.gmra.mxu2 %v81_v5  ;;  %312 = vmatpush.msrb.mxu3 %v610_v0 }
  0x30   :  { %267 = vmatpush.msrb.mxu2 %v610_v0  ;;  %211 = vmatpush.msra.mxu1 %v610_v0 }
  0x31   :  { %305 = vmatpush.msrb.mxu0 %v611_v1  ;;  %313 = vmatpush.msrb.mxu3 %v610_v0 }
  0x32   :  { %268 = vmatpush.msrb.mxu2 %v610_v0  ;;  %212 = vmatpush.msra.mxu1 %v610_v0 }
  0x33   :  { %307 = vmatmul.f32.vlgmr.msrb.gmra.mxu0 %v688_v10  ;;  %314 = vmatpush.msrb.mxu3 %v610_v0 }
  0x34   :  { %269 = vmatpush.msrb.mxu2 %v610_v0  ;;  %213 = vmatpush.msra.mxu1 %v610_v0 }
  0x35   :  { %373 = vmatpush.msra.mxu0 %v611_v1  ;;  %315 = vmatpush.msrb.mxu3 %v610_v0 }
  0x36   :  { %270 = vmatpush.msrb.mxu2 %v610_v0  ;;  %214 = vmatpush.msra.mxu1 %v610_v0 }
  0x37   :  { %394 = vmatpush.msrb.mxu0 %v611_v1  ;;  %316 = vmatpush.msrb.mxu3 %v610_v0 }
  0x38   :  { %271 = vmatpush.msrb.mxu2 %v610_v0  ;;  %260 = vmatpush.msrb.mxu1 %v611_v1 }
  0x39   :  { %241 = vmatmul.f32.vlgmr.msra.gmra.mxu2 %v688_v10  ;;  %220 = vmatmul.f32.vlgmr.msra.gmra.mxu1 %v219_v16 }
  0x3a   :  { %272 = vmatpush.msrb.mxu2 %v610_v0  ;;  %317 = vmatpush.msrb.mxu3 %v610_v0 }
  0x3b   :  { %333 = vmatpush.msra.mxu1 %v610_v0  ;;  %375 = vmatmul.f32.vlgmr.msra.gmra.mxu0 %v731_v17 }
  0x3c   :  { %273 = vmatpush.msrb.mxu2 %v610_v0  ;;  %318 = vmatpush.msrb.mxu3 %v610_v0 }
  0x3d   :  { %334 = vmatpush.msra.mxu1 %v610_v0  ;;  %401 = vmatpush.msra.mxu0 %v610_v0 }
  0x3e   :  { %274 = vmatpush.msrb.mxu2 %v610_v0  ;;  %319 = vmatpush.msrb.mxu3 %v610_v0 }
  0x3f   :  { %335 = vmatpush.msra.mxu1 %v610_v0  ;;  %402 = vmatpush.msra.mxu0 %v610_v0 }
  0x40   :  { %275 = vmatpush.msrb.mxu2 %v610_v0  ;;  %320 = vmatpush.msrb.mxu3 %v610_v0 }
  0x41   :  { %336 = vmatpush.msra.mxu1 %v610_v0  ;;  %403 = vmatpush.msra.mxu0 %v610_v0 }
  0x42   :  { %276 = vmatpush.msrb.mxu2 %v610_v0  ;;  %321 = vmatpush.msrb.mxu3 %v610_v0 }
  0x43   :  { %337 = vmatpush.msra.mxu1 %v610_v0  ;;  %404 = vmatpush.msra.mxu0 %v610_v0 }
  0x44   :  { %277 = vmatpush.msrb.mxu2 %v610_v0  ;;  %322 = vmatpush.msrb.mxu3 %v610_v0 }
  0x45   :  { %338 = vmatpush.msra.mxu1 %v610_v0  ;;  %405 = vmatpush.msra.mxu0 %v610_v0 }
  0x46   :  { %278 = vmatpush.msrb.mxu2 %v610_v0  ;;  %323 = vmatpush.msrb.mxu3 %v610_v0 }
  0x47   :  { %339 = vmatpush.msra.mxu1 %v610_v0  ;;  %406 = vmatpush.msra.mxu0 %v610_v0 }
  0x48   :  { %279 = vmatpush.msrb.mxu2 %v610_v0  ;;  %324 = vmatpush.msrb.mxu3 %v610_v0 }
  0x49   :  { %340 = vmatpush.msra.mxu1 %v610_v0  ;;  %407 = vmatpush.msra.mxu0 %v610_v0 }
  0x4a   :  { %280 = vmatpush.msrb.mxu2 %v610_v0  ;;  %325 = vmatpush.msrb.mxu3 %v610_v0 }
  0x4b   :  { %341 = vmatpush.msra.mxu1 %v610_v0  ;;  %408 = vmatpush.msra.mxu0 %v610_v0 }
  0x4c   :  { %281 = vmatpush.msrb.mxu2 %v610_v0  ;;  %326 = vmatpush.msrb.mxu3 %v610_v0 }
  0x4d   :  { %342 = vmatpush.msra.mxu1 %v610_v0  ;;  %409 = vmatpush.msra.mxu0 %v610_v0 }
  0x4e   :  { %263 = vmatmul.f32.vlgmr.msrb.gmra.mxu1 %v699_v12  ;;  %445 = vmatpush.msra.mxu3 %v610_v0 }
  0x4f   :  { %282 = vmatpush.msrb.mxu2 %v610_v0  ;;  %343 = vmatpush.msra.mxu1 %v610_v0 }
  0x50   :  { %286 = vmatmul.f32.vlgmr.msrb.gmra.mxu2 %v217_v13  ;;  %446 = vmatpush.msra.mxu3 %v610_v0 }
  0x51   :  { %344 = vmatpush.msra.mxu1 %v610_v0  ;;  %410 = vmatpush.msra.mxu0 %v610_v0 }
  0x52   :  { %328 = vmatmul.f32.vlgmr.msrb.gmra.mxu3 %v688_v10  ;;  %439 = vmatpush.msra.mxu2 %v611_v1 }
  0x53   :  { %447 = vmatpush.msra.mxu3 %v610_v0  ;;  %345 = vmatpush.msra.mxu1 %v610_v0 }
  0x54   :  { %411 = vmatpush.msra.mxu0 %v610_v0 }
  0x55   :  { %448 = vmatpush.msra.mxu3 %v610_v0  ;;  %346 = vmatpush.msra.mxu1 %v610_v0 }
  0x56   :  { %412 = vmatpush.msra.mxu0 %v610_v0 }
  0x57   :  { %397 = vmatmul.f32.vlgmr.msrb.gmra.mxu0 %v350_v18  ;;  %449 = vmatpush.msra.mxu3 %v610_v0 }
  0x58   :  { %347 = vmatpush.msra.mxu1 %v610_v0  ;;  %413 = vmatpush.msra.mxu0 %v610_v0 }
  0x59   :  { %450 = vmatpush.msra.mxu3 %v610_v0  ;;  %441 = vmatmul.f32.vlgmr.msra.gmra.mxu2 %v731_v17 }
  0x5a   :  { %348 = vmatpush.msra.mxu1 %v610_v0  ;;  %414 = vmatpush.msra.mxu0 %v610_v0 }
  0x5b   :  { %354 = vmatmul.f32.vlgmr.msra.gmra.mxu1 %v353_v21  ;;  %451 = vmatpush.msra.mxu3 %v610_v0 }
  0x5c   :  { %415 = vmatpush.msra.mxu0 %v610_v0 }
  0x5d   :  { %452 = vmatpush.msra.mxu3 %v610_v0 }
  0x5e   :  { %416 = vmatpush.msra.mxu0 %v610_v0 }
  0x5f   :  { %420 = vmatmul.f32.vlgmr.msra.gmra.mxu0 %v351_v19  ;;  %453 = vmatpush.msra.mxu3 %v610_v0 }
  0x61   :  { %454 = vmatpush.msra.mxu3 %v610_v0 }
  0x63   :  { %455 = vmatpush.msra.mxu3 %v610_v0 }
  0x65   :  { %456 = vmatpush.msra.mxu3 %v610_v0 }
  0x67   :  { %457 = vmatpush.msra.mxu3 %v610_v0 }
  0x69   :  { %458 = vmatpush.msra.mxu3 %v610_v0 }
  0x6b   :  { %459 = vmatpush.msra.mxu3 %v610_v0 }
  0x6d   :  { %460 = vmatpush.msra.mxu3 %v610_v0  ;;  %v479_v0 = vld [vmem:[#allocation2] sm:$0xff] }
  0x6e   :  { %462 = vmatmul.f32.vlgmr.msra.gmra.mxu3 %v731_v17 }
  0x8e   :  { %v108_v22 = vpop.f32.mrf.mxu1 }
  0xa4   :  { %v130_v25 = vpop.f32.mrf.mxu2 }
  0xa8   :  { %v87_v23 = vpop.f32.mrf.mxu0 }
  0xa9   :  { %v109_v52 = vadd.f32 %v108_v22, %v87_v23 }
  0xaa   :  { %v174_v24 = vpop.f32.mrf.mxu1 }
  0xab   :  { %v131_v54 = vadd.f32 %v130_v25, %v109_v52 }
  0xaf   :  { %v153_v33 = vpop.f32.mrf.mxu3 }
  0xb0   :  { %v308_v26 = vpop.f32.mrf.mxu0  ;;  %v154_v56 = vadd.f32 %v153_v33, %v131_v54 }
  0xb2   :  { %v195_v28 = vpop.f32.mrf.mxu2  ;;  %v175_v59 = vadd.f32 %v174_v24, %v154_v56 }
  0xb4   :  { %v196_v62 = vadd.f32 %v195_v28, %v175_v59 }
  0xb6   :  { %v221_v27 = vpop.f32.mrf.mxu1 }
  0xb8   :  { %v376_v29 = vpop.f32.mrf.mxu0 }
  0xbc   :  { %v242_v31 = vpop.f32.mrf.mxu2 }
  0xbd   :  { %v243_v35 = vadd.f32 %v242_v31, %v221_v27 }
  0xcb   :  { %v264_v30 = vpop.f32.mrf.mxu1 }
  0xcc   :  { %v265_v38 = vadd.f32 %v264_v30, %v243_v35 }
  0xd3   :  { %v287_v37 = vpop.f32.mrf.mxu2 }
  0xd4   :  { %v398_v32 = vpop.f32.mrf.mxu0  ;;  %v288_v42 = vadd.f32 %v287_v37, %v265_v38 }
  0xd5   :  { %v329_v40 = vpop.f32.mrf.mxu3 }
  0xd6   :  { %v309_v45 = vadd.f32 %v308_v26, %v288_v42 }
  0xd8   :  { %v355_v34 = vpop.f32.mrf.mxu1  ;;  %v330_v48 = vadd.f32 %v329_v40, %v309_v45 }
  0xd9   :  { %v377_v36 = vadd.f32 %v376_v29, %v355_v34 }
  0xdb   :  { %v399_v39 = vadd.f32 %v398_v32, %v377_v36 }
  0xdc   :  { %v421_v41 = vpop.f32.mrf.mxu0  ;;  %v442_v44 = vpop.f32.mrf.mxu2 }
  0xdd   :  { %v422_v43 = vadd.f32 %v421_v41, %v399_v39 }
  0xdf   :  { %v443_v46 = vadd.f32 %v442_v44, %v422_v43 }
  0xf1   :  { %v463_v47 = vpop.f32.mrf.mxu3 }
  0xf2   :  { %v464_v49 = vadd.f32 %v463_v47, %v443_v46 }
  0xf4   :  { %v466_v50 = vmul.f32 %v464_v49, %v330_v48 }
  0xf6   :  { %v467_v51 = vmax.f32 %v466_v50, 1e-16 }
  0xf8   :  { %528 = vrsqrt.f32 %v467_v51  ;;  %vm474_vm2 = vweird.f32 %v467_v51 }
  0xfe   :  { %v529_v53 = vpop.eup %528 }
  0xff   :  { %v469_v55 = vmul.f32 %v529_v53, %v467_v51  ;;  %vm475_vm1 = vweird.f32 %v529_v53 }
 0x100   :  { %vm476_vm3 = vmor %vm474_vm2, %vm475_vm1 }
 0x101   :  { %v470_v57 = vmul.f32 %v529_v53, %v469_v55 }
 0x103   :  { %v471_v58 = vmul.f32 0.5, %v470_v57 }
 0x105   :  { %v472_v60 = vsub.f32 1.5, %v471_v58 }
 0x107   :  { %v473_v61 = vmul.f32 %v529_v53, %v472_v60 }
 0x109   :  { %v477_v63 = vsel %vm476_vm3, %v529_v53, %v473_v61 }
 0x10a   :  { %v478_v1 = vmul.f32 %v477_v63, %v196_v62 }
 0x10c   :  { %v480_v2 = vadd.f32 %v479_v0, %v478_v1 }
 0x10e   :  { %482 = vst.msk [vmem:[#allocation2] sm:$0xff] %vm60_vm0, %v480_v2 }
 0x115   :  { %v486_v3 = vld [vmem:[#allocation2] sm:$0xff] }
 0x116   :  { %v487_v4 = vsel %vm60_vm0, %v486_v3, 0.0 }
 0x117   :  { %488 = vadd.xlane.f32.xlu0 %v487_v4 }
 0x18a   :  { %v489_v5 = vpop.xlane.xlu0 %488 }
 0x18b   :  { %v490_v6 = vrot.slane %v489_v5, 4 }
 0x18d   :  { %v491_v7 = vadd.f32 %v490_v6, %v489_v5 }
 0x18f   :  { %v492_v8 = vrot.slane %v491_v7, 2 }
 0x191   :  { %v493_v9 = vadd.f32 %v492_v8, %v491_v7 }
 0x193   :  { %v494_v10 = vrot.slane %v493_v9, 1 }
 0x195   :  { %v495_v11 = vadd.f32 %v494_v10, %v493_v9 }
 0x197   :  { %521 = vpush %v495_v11 }
 0x1c8   :  { %s522_s22 = spop %521 }
 0x1c9   :  { %v497_v12 = vstv %s522_s22 }
 0x1ca   :  { %498 = vst [vmem:[#allocation8] sm:$0x1] %v497_v12 }
 0x1cb   :  { %509 = dma.vmem_to_hbm [thread:$0]  %s505_s1, 16, %s507_s21, [#allocation5]  }
 0x1cc   :  { %606 = dma.done.wait [#allocation5], 16  }
 0x1cd   :  { %607 = vsyncadd [#allocation5], 4294967280 }
 0x1ce   :  { %514 = vsyncpa [#allocation4], 1 }
 0x1cf   :  { %515 = vsyncpa [#allocation7], 1 }
 0x1d0   :  { %516 = vsyncpa [#allocation5], 1 }

</bundles_post_ra>
